<compile_context>
chip_gen: v5e
topology: v5e:2x2
jax: 0.10.0
libtpu: 0.0.40
codegen_flags: <defaults>
</compile_context>

<pallas_src>
import functools
import operator

import jax
import jax.numpy as jnp
from jax import lax
from jax.experimental import pallas as pl
from jax.experimental.pallas import tpu as pltpu


def _round_up(n, m):
    return ((n + m - 1) // m) * m


def _vmem_limit_bytes():
    # Raise the scoped VMEM limit above the conservative default while staying
    # under the physical budget of the current generation (64 MiB on v7x).
    cap = 64 * 1024 * 1024  # safe fallback = smallest (v7x) physical VMEM
    try:
        cap = int(getattr(pltpu.get_tpu_info(), "vmem_capacity_bytes", cap))
    except Exception:
        pass
    return min(96 * 1024 * 1024, (cap * 3) // 4)


def tied_head_forward(x, tied_emb, class_w, pre_w=None, *,
                      tm=1024, tn=512, compute_dtype=None):
    """Pallas implementation of TiedHeadModule.forward.

    x        : (..., input_dim)
    tied_emb : (num_words, emb_dim)
    class_w  : (num_classes, input_dim)
    pre_w    : (emb_dim, input_dim) or None (required iff input_dim != emb_dim)
    compute_dtype : optional matmul-input dtype (bf16 recommended on v5e/v6e/
                    v7x); accumulation is always f32, output is always f32.
                    Note: with bf16, the pre-projection h is accumulated in
                    f32 then rounded to bf16 before the vocab matmul (one
                    extra rounding step vs the PyTorch f32 path).
    returns  : (inp_sz, num_words + num_classes) float32
    """
    *lead, input_dim = x.shape
    inp_sz = int(functools.reduce(operator.mul, lead, 1))
    xf = x.reshape(inp_sz, input_dim)

    num_words, emb_dim = tied_emb.shape
    num_classes = class_w.shape[0]
    out_dim = num_words + num_classes

    if compute_dtype is not None:
        xf = xf.astype(compute_dtype)
        tied_emb = tied_emb.astype(compute_dtype)
        class_w = class_w.astype(compute_dtype)
        if pre_w is not None:
            pre_w = pre_w.astype(compute_dtype)

    # Hoist the (small) pre-projection out of the vocab-tiled hot loop; use
    # dot_general so pre_w is not transposed/copied in HBM either.
    if input_dim != emb_dim:
        if pre_w is None or pre_w.shape != (emb_dim, input_dim):
            raise ValueError("pre_w of shape (emb_dim, input_dim) is required "
                             "when input_dim != emb_dim")
        h = lax.dot_general(xf, pre_w, (((1,), (1,)), ((), ())),
                            preferred_element_type=jnp.float32).astype(xf.dtype)
    else:
        h = xf

    in_bytes = jnp.dtype(xf.dtype).itemsize
    vmem_limit = _vmem_limit_bytes()
    budget = int(vmem_limit * 0.7)

    # Tile sizes: rows multiple of 8, vocab/out columns multiple of 128;
    # clamp to the problem size, then auto-shrink to fit double buffering.
    tm_eff = max(8, _round_up(min(int(tm), _round_up(inp_sz, 8)), 8))
    tn_eff = max(128, _round_up(min(int(tn), _round_up(out_dim, 128)), 128))

    def _footprint(tmv, tnv):
        return (2 * tmv * emb_dim * in_bytes        # double-buffered h tiles
                + 2 * tmv * input_dim * in_bytes    # double-buffered x tiles
                + 2 * tnv * emb_dim * in_bytes      # double-buffered emb tiles
                + 2 * tmv * tnv * 4                 # double-buffered f32 out
                + num_classes * input_dim * in_bytes)

    while _footprint(tm_eff, tn_eff) > budget:
        if tm_eff > 256:
            tm_eff = _round_up(max(256, tm_eff // 2), 8)
        elif tn_eff > 128:
            tn_eff = _round_up(max(128, tn_eff // 2), 128)
        elif tm_eff > 8:
            tm_eff = _round_up(max(8, tm_eff // 2), 8)
        else:
            break

    grid_rows = pl.cdiv(inp_sz, tm_eff)
    grid_cols = pl.cdiv(out_dim, tn_eff)
    # Clamp the tied_emb block index so column tiles past the word region
    # never request a fully out-of-bounds weight block.
    max_emb_blk = max(pl.cdiv(num_words, tn_eff) - 1, 0)

    def head_kernel(h_ref, x_ref, emb_ref, cls_ref, out_ref):
        j = pl.program_id(1)
        # (tm, emb_dim) . (tn, emb_dim)^T -> (tm, tn); f32 accumulate on MXU.
        w = lax.dot_general(h_ref[...], emb_ref[...],
                            dimension_numbers=(((1,), (1,)), ((), ())),
                            preferred_element_type=jnp.float32)
        out_ref[...] = w.astype(out_ref.dtype)

        # Only the boundary tile(s) contain the class columns: blend the tiny
        # class matmul into columns [num_words, num_words + num_classes).
        @pl.when((j + 1) * tn_eff > num_words)
        def _():
            c = lax.dot_general(x_ref[...], cls_ref[...],
                                dimension_numbers=(((1,), (1,)), ((), ())),
                                preferred_element_type=jnp.float32)
            col = j * tn_eff + lax.broadcasted_iota(
                jnp.int32, (tm_eff, tn_eff), 1)
            o = out_ref[...]
            for k in range(num_classes):
                o = jnp.where(col == num_words + k,
                              c[:, k:k + 1].astype(o.dtype), o)
            out_ref[...] = o

    cost = pl.CostEstimate(
        flops=int(2 * inp_sz * num_words * emb_dim
                  + 2 * inp_sz * num_classes * input_dim),
        transcendentals=0,
        bytes_accessed=int(inp_sz * (emb_dim + input_dim) * in_bytes
                           + grid_rows * num_words * emb_dim * in_bytes
                           + num_classes * input_dim * in_bytes
                           + inp_sz * out_dim * 4),
    )

    out = pl.pallas_call(
        head_kernel,
        out_shape=jax.ShapeDtypeStruct((inp_sz, out_dim), jnp.float32),
        grid_spec=pltpu.PrefetchScalarGridSpec(
            num_scalar_prefetch=0,
            grid=(grid_rows, grid_cols),
            in_specs=[
                # h: re-used across the vocab axis (DMA'd once per row tile).
                pl.BlockSpec((tm_eff, emb_dim), lambda i, j: (i, 0)),
                # x: only needed for the class logits (once per row tile).
                pl.BlockSpec((tm_eff, input_dim), lambda i, j: (i, 0)),
                # tied_emb streamed untransposed, double buffered.
                pl.BlockSpec((tn_eff, emb_dim),
                             lambda i, j: (jnp.minimum(j, max_emb_blk), 0)),
                # class weight: tiny, resident.
                pl.BlockSpec((num_classes, input_dim), lambda i, j: (0, 0)),
            ],
            out_specs=pl.BlockSpec((tm_eff, tn_eff), lambda i, j: (i, j)),
        ),
        compiler_params=pltpu.CompilerParams(
            dimension_semantics=("parallel", "parallel"),
            vmem_limit_bytes=vmem_limit),
        cost_estimate=cost,
    )(h, xf, tied_emb, class_w)
    return out


def tied_head_reference(x, tied_emb, class_w, pre_w=None):
    *lead, input_dim = x.shape
    inp_sz = int(functools.reduce(operator.mul, lead, 1))
    xf = x.reshape(inp_sz, input_dim).astype(jnp.float32)
    num_words, emb_dim = tied_emb.shape
    if input_dim != emb_dim:
        h = xf @ pre_w.astype(jnp.float32).T
    else:
        h = xf
    word = h @ tied_emb.astype(jnp.float32).T
    clas = xf @ class_w.astype(jnp.float32).T
    return jnp.concatenate([word, clas], axis=-1)


if __name__ == "__main__":
    # Small synthetic configuration (q_noise=0 path: quant_noise is identity).
    batch, seq = 2, 8          # leading dims of the input
    input_dim = 32             # model hidden size
    emb_dim = 16               # tied embedding dim (!= input_dim -> pre-projection)
    num_words = 40             # head vocab chunk (cutoff[0])
    num_classes = 8            # cluster classes (len(cutoff) - 1)

    key = jax.random.PRNGKey(0)
    k_x, k_emb, k_cls, k_pre = jax.random.split(key, 4)

    x = jax.random.normal(k_x, (batch, seq, input_dim), dtype=jnp.float32)
    tied_emb = jax.random.normal(k_emb, (num_words, emb_dim), dtype=jnp.float32) * 0.1
    class_w = jax.random.normal(k_cls, (num_classes, input_dim), dtype=jnp.float32) * 0.1
    pre_w = jax.random.normal(k_pre, (emb_dim, input_dim), dtype=jnp.float32) * 0.1

    # 1) f32 path, pre-projection branch.
    out = jax.block_until_ready(tied_head_forward(x, tied_emb, class_w, pre_w))
    ref = tied_head_reference(x, tied_emb, class_w, pre_w)
    assert out.shape == (batch * seq, num_words + num_classes), out.shape
    assert out.dtype == jnp.float32
    assert jnp.allclose(out, ref, atol=1e-4, rtol=1e-4), "mismatch vs reference"

    # 2) f32 path, input_dim == emb_dim branch (no pre-projection).
    tied_emb2 = jax.random.normal(k_emb, (num_words, input_dim), dtype=jnp.float32) * 0.1
    out2 = jax.block_until_ready(tied_head_forward(x, tied_emb2, class_w))
    ref2 = tied_head_reference(x, tied_emb2, class_w)
    assert jnp.allclose(out2, ref2, atol=1e-4, rtol=1e-4), "mismatch (noproj)"

    # 3) Multi-tile grid (2 row tiles x 3 column tiles, ragged vocab, class
    #    logits blended into the last tile).
    tied_emb3 = jax.random.normal(k_emb, (300, emb_dim), dtype=jnp.float32) * 0.1
    out3 = jax.block_until_ready(
        tied_head_forward(x, tied_emb3, class_w, pre_w, tm=8, tn=128))
    ref3 = tied_head_reference(x, tied_emb3, class_w, pre_w)
    assert out3.shape == (batch * seq, 300 + num_classes)
    assert jnp.allclose(out3, ref3, atol=1e-4, rtol=1e-4), "mismatch (tiled)"

    # 4) Class columns spanning a tile boundary (num_words=126, tn=128:
    #    classes 0-1 land in tile 0, classes 2-7 in tile 1).
    tied_emb4 = jax.random.normal(k_emb, (126, emb_dim), dtype=jnp.float32) * 0.1
    out4 = jax.block_until_ready(
        tied_head_forward(x, tied_emb4, class_w, pre_w, tm=8, tn=128))
    ref4 = tied_head_reference(x, tied_emb4, class_w, pre_w)
    assert out4.shape == (batch * seq, 126 + num_classes)
    assert jnp.allclose(out4, ref4, atol=1e-4, rtol=1e-4), "mismatch (split class)"

    # 5) bf16 feed (recommended on v5e/v6e/v7x): f32 accumulate, loose tol.
    out5 = jax.block_until_ready(
        tied_head_forward(x, tied_emb, class_w, pre_w,
                          compute_dtype=jnp.bfloat16))
    assert out5.dtype == jnp.float32
    assert jnp.allclose(out5, ref, atol=5e-2, rtol=5e-2), "mismatch (bf16)"

    print("KERNEL_OK")
</pallas_src>

<mosaic_0001>
module attributes {stable_mosaic.version = 11 : i64} {
  func.func @head_kernel(%arg0: i32, %arg1: i32, %arg2: memref<16x16xf32, #tpu.memory_space<vmem>>, %arg3: memref<16x32xf32, #tpu.memory_space<vmem>>, %arg4: memref<128x16xf32, #tpu.memory_space<vmem>>, %arg5: memref<8x32xf32, #tpu.memory_space<vmem>>, %arg6: memref<16x128xf32, #tpu.memory_space<vmem>>) attributes {dimension_semantics = [#tpu.dimension_semantics<parallel>, #tpu.dimension_semantics<parallel>], iteration_bounds = array<i64: 1, 1>, scalar_prefetch = 0 : i64, scratch_operands = 0 : i64, tpu.core_type = #tpu.core_type<tc>, window_params = [{transform_indices = @transform_0, window_bounds = array<i64: 16, 16>}, {transform_indices = @transform_1, window_bounds = array<i64: 16, 32>}, {transform_indices = @transform_2, window_bounds = array<i64: 128, 16>}, {pipeline_mode = #tpu.pipeline_mode<synchronous>, transform_indices = @transform_3, window_bounds = array<i64: 8, 32>}, {transform_indices = @transform_4, window_bounds = array<i64: 16, 128>}]} {
    %c0 = arith.constant 0 : index
    %c0_0 = arith.constant 0 : index
    %0 = vector.load %arg2[%c0, %c0_0] : memref<16x16xf32, #tpu.memory_space<vmem>>, vector<16x16xf32>
    %c0_1 = arith.constant 0 : index
    %c0_2 = arith.constant 0 : index
    %1 = vector.load %arg4[%c0_1, %c0_2] : memref<128x16xf32, #tpu.memory_space<vmem>>, vector<128x16xf32>
    %cst = arith.constant dense<0.000000e+00> : vector<16x128xf32>
    %2 = tpu.matmul %0, %1, %cst {dimension_numbers = #tpu.dot_dimension_numbers<[1], [1], [0], [0], [0, 0, 1, 0], [], []>} : vector<16x16xf32>, vector<128x16xf32>, vector<16x128xf32> -> vector<16x128xf32>
    %c0_3 = arith.constant 0 : index
    %c0_4 = arith.constant 0 : index
    %3 = vector.load %arg6[%c0_3, %c0_4] : memref<16x128xf32, #tpu.memory_space<vmem>>, vector<16x128xf32>
    tpu.vector_store %arg6[%c0_3, %c0_4], %2 {strides = array<i32>} : memref<16x128xf32, #tpu.memory_space<vmem>>, vector<16x128xf32>,
    %c1_i32 = arith.constant 1 : i32
    %4 = arith.addi %arg1, %c1_i32 : i32
    %c128_i32 = arith.constant 128 : i32
    %5 = arith.muli %4, %c128_i32 : i32
    %c40_i32 = arith.constant 40 : i32
    %6 = arith.cmpi sgt, %5, %c40_i32 : i32
    %7 = arith.extui %6 : i1 to i32
    %c0_i32 = arith.constant 0 : i32
    %8 = arith.cmpi ne, %7, %c0_i32 : i32
    scf.if %8 {
      %c0_5 = arith.constant 0 : index
      %c0_6 = arith.constant 0 : index
      %9 = vector.load %arg3[%c0_5, %c0_6] : memref<16x32xf32, #tpu.memory_space<vmem>>, vector<16x32xf32>
      %c0_7 = arith.constant 0 : index
      %c0_8 = arith.constant 0 : index
      %10 = vector.load %arg5[%c0_7, %c0_8] : memref<8x32xf32, #tpu.memory_space<vmem>>, vector<8x32xf32>
      %cst_9 = arith.constant dense<0.000000e+00> : vector<16x8xf32>
      %11 = tpu.matmul %9, %10, %cst_9 {dimension_numbers = #tpu.dot_dimension_numbers<[1], [1], [0], [0], [0, 0, 1, 0], [], []>} : vector<16x32xf32>, vector<8x32xf32>, vector<16x8xf32> -> vector<16x8xf32>
      %c128_i32_10 = arith.constant 128 : i32
      %12 = arith.muli %arg1, %c128_i32_10 : i32
      %13 = tpu.iota {dimensions = array<i32: 1>} : vector<16x128xi32>
      %14 = vector.broadcast %12 : i32 to vector<16x128xi32>
      %15 = arith.addi %14, %13 : vector<16x128xi32>
      %c0_11 = arith.constant 0 : index
      %c0_12 = arith.constant 0 : index
      %16 = vector.load %arg6[%c0_11, %c0_12] : memref<16x128xf32, #tpu.memory_space<vmem>>, vector<16x128xf32>
      %c40_i32_13 = arith.constant 40 : i32
      %17 = vector.broadcast %c40_i32_13 : i32 to vector<16x128xi32>
      %18 = arith.cmpi eq, %15, %17 : vector<16x128xi32>
      %19 = vector.extract_strided_slice %11 {offsets = [0, 0], sizes = [16, 1], strides = [1, 1]} : vector<16x8xf32> to vector<16x1xf32>
      %20 = vector.shape_cast %19 : vector<16x1xf32> to vector<16x1xf32>
      %21 = vector.broadcast %20 : vector<16x1xf32> to vector<16x128xf32>
      %22 = arith.select %18, %21, %16 : vector<16x128xi1>, vector<16x128xf32>
      %c41_i32 = arith.constant 41 : i32
      %23 = vector.broadcast %c41_i32 : i32 to vector<16x128xi32>
      %24 = arith.cmpi eq, %15, %23 : vector<16x128xi32>
      %25 = vector.extract_strided_slice %11 {offsets = [0, 1], sizes = [16, 1], strides = [1, 1]} : vector<16x8xf32> to vector<16x1xf32>
      %26 = vector.shape_cast %25 : vector<16x1xf32> to vector<16x1xf32>
      %27 = vector.broadcast %26 : vector<16x1xf32> to vector<16x128xf32>
      %28 = arith.select %24, %27, %22 : vector<16x128xi1>, vector<16x128xf32>
      %c42_i32 = arith.constant 42 : i32
      %29 = vector.broadcast %c42_i32 : i32 to vector<16x128xi32>
      %30 = arith.cmpi eq, %15, %29 : vector<16x128xi32>
      %31 = vector.extract_strided_slice %11 {offsets = [0, 2], sizes = [16, 1], strides = [1, 1]} : vector<16x8xf32> to vector<16x1xf32>
      %32 = vector.shape_cast %31 : vector<16x1xf32> to vector<16x1xf32>
      %33 = vector.broadcast %32 : vector<16x1xf32> to vector<16x128xf32>
      %34 = arith.select %30, %33, %28 : vector<16x128xi1>, vector<16x128xf32>
      %c43_i32 = arith.constant 43 : i32
      %35 = vector.broadcast %c43_i32 : i32 to vector<16x128xi32>
      %36 = arith.cmpi eq, %15, %35 : vector<16x128xi32>
      %37 = vector.extract_strided_slice %11 {offsets = [0, 3], sizes = [16, 1], strides = [1, 1]} : vector<16x8xf32> to vector<16x1xf32>
      %38 = vector.shape_cast %37 : vector<16x1xf32> to vector<16x1xf32>
      %39 = vector.broadcast %38 : vector<16x1xf32> to vector<16x128xf32>
      %40 = arith.select %36, %39, %34 : vector<16x128xi1>, vector<16x128xf32>
      %c44_i32 = arith.constant 44 : i32
      %41 = vector.broadcast %c44_i32 : i32 to vector<16x128xi32>
      %42 = arith.cmpi eq, %15, %41 : vector<16x128xi32>
      %43 = vector.extract_strided_slice %11 {offsets = [0, 4], sizes = [16, 1], strides = [1, 1]} : vector<16x8xf32> to vector<16x1xf32>
      %44 = vector.shape_cast %43 : vector<16x1xf32> to vector<16x1xf32>
      %45 = vector.broadcast %44 : vector<16x1xf32> to vector<16x128xf32>
      %46 = arith.select %42, %45, %40 : vector<16x128xi1>, vector<16x128xf32>
      %c45_i32 = arith.constant 45 : i32
      %47 = vector.broadcast %c45_i32 : i32 to vector<16x128xi32>
      %48 = arith.cmpi eq, %15, %47 : vector<16x128xi32>
      %49 = vector.extract_strided_slice %11 {offsets = [0, 5], sizes = [16, 1], strides = [1, 1]} : vector<16x8xf32> to vector<16x1xf32>
      %50 = vector.shape_cast %49 : vector<16x1xf32> to vector<16x1xf32>
      %51 = vector.broadcast %50 : vector<16x1xf32> to vector<16x128xf32>
      %52 = arith.select %48, %51, %46 : vector<16x128xi1>, vector<16x128xf32>
      %c46_i32 = arith.constant 46 : i32
      %53 = vector.broadcast %c46_i32 : i32 to vector<16x128xi32>
      %54 = arith.cmpi eq, %15, %53 : vector<16x128xi32>
      %55 = vector.extract_strided_slice %11 {offsets = [0, 6], sizes = [16, 1], strides = [1, 1]} : vector<16x8xf32> to vector<16x1xf32>
      %56 = vector.shape_cast %55 : vector<16x1xf32> to vector<16x1xf32>
      %57 = vector.broadcast %56 : vector<16x1xf32> to vector<16x128xf32>
      %58 = arith.select %54, %57, %52 : vector<16x128xi1>, vector<16x128xf32>
      %c47_i32 = arith.constant 47 : i32
      %59 = vector.broadcast %c47_i32 : i32 to vector<16x128xi32>
      %60 = arith.cmpi eq, %15, %59 : vector<16x128xi32>
      %61 = vector.extract_strided_slice %11 {offsets = [0, 7], sizes = [16, 1], strides = [1, 1]} : vector<16x8xf32> to vector<16x1xf32>
      %62 = vector.shape_cast %61 : vector<16x1xf32> to vector<16x1xf32>
      %63 = vector.broadcast %62 : vector<16x1xf32> to vector<16x128xf32>
      %64 = arith.select %60, %63, %58 : vector<16x128xi1>, vector<16x128xf32>
      %c0_14 = arith.constant 0 : index
      %c0_15 = arith.constant 0 : index
      %65 = vector.load %arg6[%c0_14, %c0_15] : memref<16x128xf32, #tpu.memory_space<vmem>>, vector<16x128xf32>
      tpu.vector_store %arg6[%c0_14, %c0_15], %64 {strides = array<i32>} : memref<16x128xf32, #tpu.memory_space<vmem>>, vector<16x128xf32>,
    } else {
    }
    return
  }
  func.func @transform_0(%arg0: i32, %arg1: i32) -> (i32, i32) {
    %c0_i32 = arith.constant 0 : i32
    %c0_i32_0 = arith.constant 0 : i32
    return %arg0, %c0_i32 : i32, i32
  }
  func.func @transform_1(%arg0: i32, %arg1: i32) -> (i32, i32) {
    %c0_i32 = arith.constant 0 : i32
    %c0_i32_0 = arith.constant 0 : i32
    return %arg0, %c0_i32 : i32, i32
  }
  func.func @transform_2(%arg0: i32, %arg1: i32) -> (i32, i32) {
    %c0_i32 = arith.constant 0 : i32
    %0 = arith.minsi %arg1, %c0_i32 : i32
    %c0_i32_0 = arith.constant 0 : i32
    %c0_i32_1 = arith.constant 0 : i32
    return %0, %c0_i32_0 : i32, i32
  }
  func.func @transform_3(%arg0: i32, %arg1: i32) -> (i32, i32) {
    %c0_i32 = arith.constant 0 : i32
    %c0_i32_0 = arith.constant 0 : i32
    %c0_i32_1 = arith.constant 0 : i32
    return %c0_i32, %c0_i32_0 : i32, i32
  }
  func.func @transform_4(%arg0: i32, %arg1: i32) -> (i32, i32) {
    %c0_i32 = arith.constant 0 : i32
    return %arg0, %arg1 : i32, i32
  }
}

</mosaic_0001>

<bundles_post_ra>
// kernel: tpu_custom_call.1
= control target key start
LH: loop header
LB: loop body
LE: loop exit
PB: predicated region body
PF: predicated region fallthrough
CT: control target
= control target key end

     0   :  { %vm125_vm0 = vcmask 261120   ;;  %vm36_vm1 = vcmask 130048   ;;  %s520_s0 = inlined_call_operand.vmem [shape: f32[16,16], index: 0, kind: input, shape index: {}]   ;;  %s521_s1 = inlined_call_operand.vmem [shape: f32[16,32], index: 1, kind: input, shape index: {}]   ;;  %s522_s2 = inlined_call_operand.vmem [shape: f32[40,16], index: 2, kind: input, shape index: {}]   ;;  %s523_s3 = inlined_call_operand.vmem [shape: f32[8,32], index: 3, kind: input, shape index: {}]   ;;  %s524_s4 = inlined_call_operand.hbm [shape: f32[16,48], index: 4, kind: output, shape index: {}]  }
   0x1   :  { %v124_v0 = vld [vmem:[%s523_s3] sm:$0xff]  ;;  %v35_v2 = vld [vmem:[%s522_s2 + $0x78] sm:$0xff]  ;;  %v34_v3 = vld [vmem:[%s522_s2 + $0x70] sm:$0xff] }
   0x2   :  { %293 = vmatpush.xpose.msk.msra.mxu1 %vm125_vm0, %v124_v0  ;;  %v122_v1 = vld [vmem:[%s521_s1] sm:$0xff]  ;;  %275 = vmatpush.xpose.msk.msra.mxu0 %vm36_vm1, %v35_v2 }
   0x3   :  { %296 = vmatpush.xpose.msk.msra.mxu2 %vm36_vm1, %v35_v2 }
   0x5   :  { %294 = vmatmul.msk.f32.vlgmr.msra.gmra.mxu1 %vm125_vm0, %v122_v1 }
   0x6   :  { %9 = vsyncpa [#allocation3], 0  ;;  %276 = vmatpush.xpose.msk.msra.mxu0 %vm36_vm1, %v34_v3  ;;  %v33_v4 = vld [vmem:[%s522_s2 + $0x68] sm:$0xff]  ;;  %v32_v6 = vld [vmem:[%s522_s2 + $0x60] sm:$0xff]  ;;  %v365_v13 = vmov 2   ;;  %v366_v14 = vmov 1   ;;  %v159_v39 = vlaneseq }
   0x7   :  { %297 = vmatpush.xpose.msk.msra.mxu2 %vm36_vm1, %v34_v3  ;;  %v123_v5 = vld [vmem:[%s521_s1 + $0x8] sm:$0xff]  ;;  %v31_v7 = vld [vmem:[%s522_s2 + $0x58] sm:$0xff]  ;;  %v30_v8 = vld [vmem:[%s522_s2 + $0x50] sm:$0xff]  ;;  %325 = vset.pattern.permute.xlu2 %v365_v13  ;;  %v367_v15 = vmov 0   ;;  %v368_v26 = vmov 4   ;;  %v369_v27 = vmov 3  }
   0x8   :  { %v29_v9 = vld [vmem:[%s522_s2 + $0x48] sm:$0xff]  ;;  %v28_v10 = vld [vmem:[%s522_s2 + $0x40] sm:$0xff]  ;;  %v27_v11 = vld [vmem:[%s522_s2 + $0x38] sm:$0xff]  ;;  %324 = vset.pattern.permute.xlu1 %v366_v14  ;;  %323 = vset.pattern.permute.xlu0 %v367_v15  ;;  %v370_v28 = vmov 5   ;;  %v371_v29 = vmov 6   ;;  %v372_v30 = vmov 7  }
   0x9   :  { %v26_v12 = vld [vmem:[%s522_s2 + $0x30] sm:$0xff]  ;;  %v25_v16 = vld [vmem:[%s522_s2 + $0x28] sm:$0xff]  ;;  %v24_v17 = vld [vmem:[%s522_s2 + $0x20] sm:$0xff]  ;;  %v160_v40 = vand.u32 127, %v159_v39  ;;  %s263_s1 = sshll.u32 %s524_s4, 4  ;;  %s374_s30 = smov 128   ;;  %s264_s1 = int_to_ptr.hbm [resolvable:$true] %s263_s1 }
   0xa   :  { %277 = vmatpush.xpose.msk.msra.mxu0 %vm36_vm1, %v33_v4  ;;  %v23_v18 = vld [vmem:[%s522_s2 + $0x18] sm:$0xff]  ;;  %v22_v19 = vld [vmem:[%s522_s2 + $0x10] sm:$0xff]  ;;  %v21_v20 = vld [vmem:[%s522_s2 + $0x8] sm:$0xff]  ;;  %s375_s5 = smov 8  }
   0xb   :  { %298 = vmatpush.xpose.msk.msra.mxu2 %vm36_vm1, %v33_v4  ;;  %v20_v21 = vld [vmem:[%s522_s2] sm:$0xff]  ;;  %v19_v23 = vld [vmem:[%s520_s0 + $0x8] sm:$0xff]  ;;  %vm165_vm2 = vcmp.eq.s32.totalorder %v160_v40, 40  ;;  %vm178_vm3 = vcmp.eq.s32.totalorder %v160_v40, 41  ;;  %vm189_vm4 = vcmp.eq.s32.totalorder %v160_v40, 42  ;;  %vm200_vm5 = vcmp.eq.s32.totalorder %v160_v40, 43 }
   0xc   :  { %v18_v22 = vld [vmem:[%s520_s0] sm:$0xff]  ;;  %vm211_vm6 = vcmp.eq.s32.totalorder %v160_v40, 44  ;;  %vm233_vm7 = vcmp.eq.s32.totalorder %v160_v40, 46  ;;  %vm222_vm8 = vcmp.eq.s32.totalorder %v160_v40, 45  ;;  %vm244_vm9 = vcmp.eq.s32.totalorder %v160_v40, 47  ;;  %s373_s0 = smov [#allocation2]  }
   0xd   :  { %295 = vmatmul.msk.f32.gmra.mxu1 %vm125_vm0, %v123_v5  ;;  %s261_s2 = sshll.u32 %s373_s0, 4  ;;  %s262_s2 = int_to_ptr.vmem [resolvable:$true] %s261_s2 }
   0xe   :  { %278 = vmatpush.xpose.msk.msra.mxu0 %vm36_vm1, %v32_v6 }
   0xf   :  { %299 = vmatpush.xpose.msk.msra.mxu2 %vm36_vm1, %v32_v6 }
  0x12   :  { %279 = vmatpush.xpose.msk.msra.mxu0 %vm36_vm1, %v31_v7 }
  0x13   :  { %300 = vmatpush.xpose.msk.msra.mxu2 %vm36_vm1, %v31_v7 }
  0x16   :  { %280 = vmatpush.xpose.msk.msra.mxu0 %vm36_vm1, %v30_v8 }
  0x17   :  { %301 = vmatpush.xpose.msk.msra.mxu2 %vm36_vm1, %v30_v8 }
  0x1a   :  { %281 = vmatpush.xpose.msk.msra.mxu0 %vm36_vm1, %v29_v9 }
  0x1b   :  { %302 = vmatpush.xpose.msk.msra.mxu2 %vm36_vm1, %v29_v9 }
  0x1e   :  { %282 = vmatpush.xpose.msk.msra.mxu0 %vm36_vm1, %v28_v10 }
  0x1f   :  { %303 = vmatpush.xpose.msk.msra.mxu2 %vm36_vm1, %v28_v10 }
  0x22   :  { %283 = vmatpush.xpose.msk.msra.mxu0 %vm36_vm1, %v27_v11 }
  0x23   :  { %304 = vmatpush.xpose.msk.msra.mxu2 %vm36_vm1, %v27_v11 }
  0x26   :  { %284 = vmatpush.xpose.msk.msra.mxu0 %vm36_vm1, %v26_v12 }
  0x27   :  { %305 = vmatpush.xpose.msk.msra.mxu2 %vm36_vm1, %v26_v12 }
  0x2a   :  { %285 = vmatpush.xpose.msk.msra.mxu0 %vm36_vm1, %v25_v16 }
  0x2b   :  { %306 = vmatpush.xpose.msk.msra.mxu2 %vm36_vm1, %v25_v16 }
  0x2e   :  { %286 = vmatpush.xpose.msk.msra.mxu0 %vm36_vm1, %v24_v17 }
  0x2f   :  { %307 = vmatpush.xpose.msk.msra.mxu2 %vm36_vm1, %v24_v17 }
  0x32   :  { %287 = vmatpush.xpose.msk.msra.mxu0 %vm36_vm1, %v23_v18 }
  0x33   :  { %308 = vmatpush.xpose.msk.msra.mxu2 %vm36_vm1, %v23_v18 }
  0x36   :  { %288 = vmatpush.xpose.msk.msra.mxu0 %vm36_vm1, %v22_v19 }
  0x37   :  { %309 = vmatpush.xpose.msk.msra.mxu2 %vm36_vm1, %v22_v19 }
  0x3a   :  { %289 = vmatpush.xpose.msk.msra.mxu0 %vm36_vm1, %v21_v20 }
  0x3b   :  { %310 = vmatpush.xpose.msk.msra.mxu2 %vm36_vm1, %v21_v20 }
  0x3e   :  { %290 = vmatpush.xpose.msk.msra.mxu0 %vm36_vm1, %v20_v21 }
  0x3f   :  { %311 = vmatpush.xpose.msk.msra.mxu2 %vm36_vm1, %v20_v21 }
  0x41   :  { %291 = vmatmul.msk.f32.vlgmr.msra.gmra.mxu0 %vm36_vm1, %v18_v22 }
  0x42   :  { %292 = vmatmul.msk.f32.vlgmr.msra.gmra.mxu2 %vm36_vm1, %v19_v23 }
  0x82   :  { %v152_v24 = vpop.f32.mrf.mxu1 }
  0x83   :  { %191 = vperm.xlu2 %325, %v152_v24   ;;  %180 = vperm.xlu1 %324, %v152_v24  }
  0x84   :  { %168 = vperm.xlu0 %323, %v152_v24  }
  0x8a   :  { %v155_v25 = vpop.f32.mrf.mxu1 }
  0x8b   :  { %327 = vset.pattern.permute.xlu2 %v368_v26  ;;  %184 = vperm.xlu1 %324, %v155_v25  }
  0x8c   :  { %326 = vset.pattern.permute.xlu0 %v369_v27  ;;  %213 = vperm.xlu2 %327, %v152_v24  }
  0x8d   :  { %202 = vperm.xlu0 %326, %v152_v24  }
  0x93   :  { %331 = vset.pattern.permute.xlu1 %v369_v27 }
  0x94   :  { %328 = vset.pattern.permute.xlu2 %v370_v28  ;;  %206 = vperm.xlu1 %331, %v155_v25  }
  0x95   :  { %329 = vset.pattern.permute.xlu0 %v367_v15  ;;  %224 = vperm.xlu2 %328, %v152_v24  }
  0x96   :  { %173 = vperm.xlu0 %329, %v155_v25  }
  0x9c   :  { %332 = vset.pattern.permute.xlu1 %v368_v26 }
  0x9d   :  { %330 = vset.pattern.permute.xlu2 %v365_v13  ;;  %217 = vperm.xlu1 %332, %v155_v25  }
  0x9e   :  { %333 = vset.pattern.permute.xlu0 %v370_v28  ;;  %195 = vperm.xlu2 %330, %v155_v25  }
  0x9f   :  { %228 = vperm.xlu0 %333, %v155_v25  }
  0xa5   :  { %334 = vset.pattern.permute.xlu1 %v371_v29 }
  0xa6   :  { %335 = vset.pattern.permute.xlu2 %v371_v29  ;;  %235 = vperm.xlu1 %334, %v152_v24  }
  0xa7   :  { %239 = vperm.xlu2 %335, %v155_v25   ;;  %338 = vset.pattern.permute.xlu0 %v372_v30 }
  0xae   :  { %336 = vset.pattern.permute.xlu1 %v372_v30 }
  0xaf   :  { %337 = vset.pattern.permute.xlu2 %v372_v30  ;;  %246 = vperm.xlu1 %336, %v152_v24  }
  0xb0   :  { %250 = vperm.xlu2 %337, %v155_v25  }
  0xbe   :  { %v108_v50 = vpop.f32.mrf.mxu0 }
  0xc5   :  { %v111_v41 = vpop.f32.mrf.mxu2 }
  0xdd   :  { %v192_v31 = vpop.permute.xlu2 %191 }
  0xe6   :  { %v214_v32 = vpop.permute.xlu2 %213 }
  0xef   :  { %v225_v33 = vpop.permute.xlu2 %224 }
  0xf5   :  { %v181_v34 = vpop.permute.xlu1 %180 }
  0xf6   :  { %v169_v35 = vpop.permute.xlu0 %168 }
  0xf7   :  { %v176_v54 = vsel %vm165_vm2, %v169_v35, %v108_v50 }
  0xf8   :  { %v196_v37 = vpop.permute.xlu2 %195  ;;  %v187_v58 = vsel %vm178_vm3, %v181_v34, %v176_v54 }
  0xf9   :  { %v198_v60 = vsel %vm189_vm4, %v192_v31, %v187_v58 }
  0xfd   :  { %v185_v36 = vpop.permute.xlu1 %184 }
  0xff   :  { %v203_v38 = vpop.permute.xlu0 %202 }
 0x100   :  { %v209_v61 = vsel %vm200_vm5, %v203_v38, %v198_v60 }
 0x101   :  { %v240_v44 = vpop.permute.xlu2 %239  ;;  %v220_v62 = vsel %vm211_vm6, %v214_v32, %v209_v61 }
 0x102   :  { %v231_v63 = vsel %vm222_vm8, %v225_v33, %v220_v62 }
 0x106   :  { %v207_v42 = vpop.permute.xlu1 %206 }
 0x108   :  { %v174_v43 = vpop.permute.xlu0 %173 }
 0x109   :  { %v177_v45 = vsel %vm165_vm2, %v174_v43, %v111_v41 }
 0x10a   :  { %v188_v46 = vsel %vm178_vm3, %v185_v36, %v177_v45  ;;  %v251_v55 = vpop.permute.xlu2 %250 }
 0x10b   :  { %v199_v47 = vsel %vm189_vm4, %v196_v37, %v188_v46 }
 0x10c   :  { %v210_v49 = vsel %vm200_vm5, %v207_v42, %v199_v47 }
 0x10f   :  { %v218_v48 = vpop.permute.xlu1 %217 }
 0x110   :  { %v221_v51 = vsel %vm211_vm6, %v218_v48, %v210_v49 }
 0x111   :  { %v229_v52 = vpop.permute.xlu0 %228 }
 0x112   :  { %v232_v53 = vsel %vm222_vm8, %v229_v52, %v221_v51 }
 0x113   :  { %v243_v56 = vsel %vm233_vm7, %v240_v44, %v232_v53 }
 0x114   :  { %v254_v57 = vsel %vm244_vm9, %v251_v55, %v243_v56 }
 0x115   :  { %256 = vst [vmem:[#allocation2 + $0x8] sm:$0xff] %v254_v57 }
 0x118   :  { %v236_v59 = vpop.permute.xlu1 %235 }
 0x119   :  { %v242_v0 = vsel %vm233_vm7, %v236_v59, %v231_v63 }
 0x121   :  { %v247_v1 = vpop.permute.xlu1 %246 }
 0x122   :  { %v253_v2 = vsel %vm244_vm9, %v247_v1, %v242_v0 }
 0x123   :  { %255 = vst [vmem:[#allocation2] sm:$0xff] %v253_v2 }
 0x124   :  { %269 = dma.vmem_to_hbm [thread:$0]  %s262_s2, 256, %s264_s1, [#allocation3], %s374_s30, %s374_s30, %s375_s5  }
 0x125   :  { %363 = dma.done.wait [#allocation3], 256  }
 0x126   :  { %364 = vsyncadd [#allocation3], 4294967040 }
 0x127   :  { %274 = vsyncpa [#allocation3], 1 }

</bundles_post_ra>
